<compile_context>
chip_gen: v7x
topology: tpu7x:2x2x1
jax: 0.10.0
libtpu: 0.0.40
codegen_flags: <defaults>
</compile_context>

<pallas_src>
import jax
import jax.numpy as jnp
from jax.experimental import pallas as pl
from jax.experimental.pallas import tpu as pltpu


_MAX_LANE_TILE = 512                 # lanes per block (multiple of 128)
_VMEM_LIMIT = 32 * 1024 * 1024       # safe on v5e/v6e/v7x, >> our working set


def _lane_tile(n):
    # Full-extent block when small (always legal), else a 128-aligned tile.
    return n if n <= _MAX_LANE_TILE else _MAX_LANE_TILE


def _compiler_params():
    return pltpu.CompilerParams(
        dimension_semantics=("parallel",),
        vmem_limit_bytes=_VMEM_LIMIT)


# ---------------------------------------------------------------------------
# Pallas kernels
# ---------------------------------------------------------------------------
def conv_pool_tanh_kernel(pT_ref, w_ref, b_ref, o_ref):
    """tanh(max_pool2x2(conv(x)) + bias) on one lane-tile of output positions.

    pT_ref : (4, P, TR) bf16  -- four 2x2 pool members, P = C*k*k taps
    w_ref  : (OC, P)    bf16
    b_ref  : (OC, 1)    f32
    o_ref  : (OC, TR)   bf16
    Bias is added after the max (per-channel constant commutes with max pool).
    """
    w = w_ref[...]
    y = jnp.maximum(
        jnp.maximum(
            jnp.dot(w, pT_ref[0], preferred_element_type=jnp.float32),
            jnp.dot(w, pT_ref[1], preferred_element_type=jnp.float32)),
        jnp.maximum(
            jnp.dot(w, pT_ref[2], preferred_element_type=jnp.float32),
            jnp.dot(w, pT_ref[3], preferred_element_type=jnp.float32)))
    o_ref[...] = jnp.tanh(y + b_ref[...]).astype(o_ref.dtype)


def mlp_head_kernel(xT_ref, w1_ref, b1_ref, w2_ref, b2_ref, o_ref):
    """fc1 -> tanh -> fc2 -> log_softmax, transposed (classes on sublanes)."""
    h = jnp.dot(w1_ref[...], xT_ref[...], preferred_element_type=jnp.float32)
    h = jnp.tanh(h + b1_ref[...])                                   # (50, TB)
    z = jnp.dot(w2_ref[...], h, preferred_element_type=jnp.float32) + b2_ref[...]
    zs = z - jnp.max(z, axis=0, keepdims=True)                      # (10, TB)
    lse = jnp.log(jnp.sum(jnp.exp(zs), axis=0, keepdims=True))
    o_ref[...] = zs - lse


# ---------------------------------------------------------------------------
# Glue: transposed im2col (plain JAX; tiny tensors, channel-leading layout)
# ---------------------------------------------------------------------------
def _im2col_pool_T(x_cbhw, k):
    """(C, B, H, W) -> (4, C*k*k, B*OHP*OWP) patch slabs, one per pool member.

    Patch-row order is c*k*k + ki*k + kj (matches OIHW weight flatten); the
    column order is (b, oh_pooled, ow_pooled) row-major.
    """
    C, B, H, W = x_cbhw.shape
    OH, OW = H - k + 1, W - k + 1
    OHP, OWP = OH // 2, OW // 2
    taps = []
    for c in range(C):
        for ki in range(k):
            for kj in range(k):
                taps.append(x_cbhw[c, :, ki:ki + OH, kj:kj + OW])   # (B, OH, OW)
    patches = jnp.stack(taps, axis=0)                               # (P, B, OH, OW)
    members = []
    for a in range(2):
        for b in range(2):
            pm = patches[:, :, a::2, b::2]                          # (P, B, OHP, OWP)
            members.append(pm.reshape(C * k * k, B * OHP * OWP))
    return jnp.stack(members, axis=0), (B, OHP, OWP)


def conv_pool_tanh(x_cbhw, w_oihw, bias, k):
    """x: (C, B, H, W) -> (OC, B, OHP, OWP) bf16 activations."""
    OC = w_oihw.shape[0]
    pT, (B, OHP, OWP) = _im2col_pool_T(x_cbhw, k)
    pT = pT.astype(jnp.bfloat16)
    _, P, rows = pT.shape
    wm = w_oihw.reshape(OC, P).astype(jnp.bfloat16)   # columns in (c, ki, kj) order
    bm = bias.reshape(OC, 1).astype(jnp.float32)
    tr = _lane_tile(rows)
    out = pl.pallas_call(
        conv_pool_tanh_kernel,
        out_shape=jax.ShapeDtypeStruct((OC, rows), jnp.bfloat16),
        grid=(pl.cdiv(rows, tr),),
        in_specs=[
            pl.BlockSpec((4, P, tr), lambda i: (0, 0, i)),
            pl.BlockSpec((OC, P), lambda i: (0, 0)),
            pl.BlockSpec((OC, 1), lambda i: (0, 0)),
        ],
        out_specs=pl.BlockSpec((OC, tr), lambda i: (0, i)),
        compiler_params=_compiler_params(),
    )(pT, wm, bm)
    return out.reshape(OC, B, OHP, OWP)


def mlp_head(xT, fw1, fb1, fw2, fb2):
    """xT: (320, B) f32 -> (B, 10) log-softmax outputs."""
    Fin, B = xT.shape
    H, C = fw1.shape[0], fw2.shape[0]
    tb = _lane_tile(B)
    outT = pl.pallas_call(
        mlp_head_kernel,
        out_shape=jax.ShapeDtypeStruct((C, B), jnp.float32),
        grid=(pl.cdiv(B, tb),),
        in_specs=[
            pl.BlockSpec((Fin, tb), lambda i: (0, i)),
            pl.BlockSpec((H, Fin), lambda i: (0, 0)),
            pl.BlockSpec((H, 1), lambda i: (0, 0)),
            pl.BlockSpec((C, H), lambda i: (0, 0)),
            pl.BlockSpec((C, 1), lambda i: (0, 0)),
        ],
        out_specs=pl.BlockSpec((C, tb), lambda i: (0, i)),
        compiler_params=_compiler_params(),
    )(xT.astype(jnp.float32),
      fw1.astype(jnp.float32), fb1.reshape(H, 1).astype(jnp.float32),
      fw2.astype(jnp.float32), fb2.reshape(C, 1).astype(jnp.float32))
    return outT.T                                                    # (B, 10)


@jax.jit
def net_forward(x, params):
    w1, b1, w2, b2, fw1, fb1, fw2, fb2 = params
    B = x.shape[0]
    x_c = jnp.transpose(x, (1, 0, 2, 3))            # (1, B, 28, 28) channel-leading
    h1 = conv_pool_tanh(x_c, w1, b1, 5)             # (10, B, 12, 12)
    h2 = conv_pool_tanh(h1, w2, b2, 5)              # (20, B, 4, 4)
    # PyTorch x.view(-1, 320) (NCHW flatten) expressed in the transposed head
    # layout: xT[c*16 + s, b] = h2[c, b, s]
    xT = jnp.transpose(h2.reshape(20, B, 16), (0, 2, 1)).reshape(320, B)
    return mlp_head(xT.astype(jnp.float32), fw1, fb1, fw2, fb2)


# ---------------------------------------------------------------------------
# Deterministic parameter init (shapes from the PyTorch module's __init__)
# ---------------------------------------------------------------------------
def init_params(key):
    ks = jax.random.split(key, 8)

    def u(k, shape, fan_in):
        lim = 1.0 / float(fan_in) ** 0.5
        return jax.random.uniform(k, shape, jnp.float32, -lim, lim)

    w1 = u(ks[0], (10, 1, 5, 5), 25);    b1 = u(ks[1], (10,), 25)
    w2 = u(ks[2], (20, 10, 5, 5), 250);  b2 = u(ks[3], (20,), 250)
    fw1 = u(ks[4], (50, 320), 320);      fb1 = u(ks[5], (50,), 320)
    fw2 = u(ks[6], (10, 50), 50);        fb2 = u(ks[7], (10,), 50)
    return (w1, b1, w2, b2, fw1, fb1, fw2, fb2)


# ---------------------------------------------------------------------------
# Pure-JAX reference (correctness check only, f32 / HIGHEST precision)
# ---------------------------------------------------------------------------
def ref_forward(x, params):
    w1, b1, w2, b2, fw1, fb1, fw2, fb2 = params
    dn = ("NCHW", "OIHW", "NCHW")
    hi = jax.lax.Precision.HIGHEST
    h = jax.lax.conv_general_dilated(x, w1, (1, 1), "VALID",
                                     dimension_numbers=dn, precision=hi)
    h = h + b1[None, :, None, None]
    h = jax.lax.reduce_window(h, -jnp.inf, jax.lax.max, (1, 1, 2, 2), (1, 1, 2, 2), "VALID")
    h = jnp.tanh(h)
    h = jax.lax.conv_general_dilated(h, w2, (1, 1), "VALID",
                                     dimension_numbers=dn, precision=hi)
    h = h + b2[None, :, None, None]
    h = jax.lax.reduce_window(h, -jnp.inf, jax.lax.max, (1, 1, 2, 2), (1, 1, 2, 2), "VALID")
    h = jnp.tanh(h)
    h = h.reshape(h.shape[0], -1)
    h = jnp.tanh(jnp.dot(h, fw1.T, precision=hi) + fb1)
    z = jnp.dot(h, fw2.T, precision=hi) + fb2
    return jax.nn.log_softmax(z, axis=1)


if __name__ == "__main__":
    key = jax.random.PRNGKey(0)
    pk, xk = jax.random.split(key)
    params = init_params(pk)
    # MNIST geometry (28x28, 1 channel) is required so the flatten hits 320.
    x = jax.random.normal(xk, (2, 1, 28, 28), jnp.float32)

    out = jax.block_until_ready(net_forward(x, params))
    assert out.shape == (2, 10)

    ref = ref_forward(x, params)
    err = float(jnp.max(jnp.abs(out - ref)))
    # bf16 GEMM operands (f32 accumulation) in the conv stages -> 2e-2 budget.
    if err < 2e-2:
        print("KERNEL_OK")
    else:
        raise SystemExit(f"mismatch vs reference: max abs err = {err}")
</pallas_src>

<mosaic_0001>
module attributes {stable_mosaic.version = 11 : i64} {
  func.func @conv_pool_tanh_kernel(%arg0: i32, %arg1: memref<4x25x288xbf16, #tpu.memory_space<vmem>>, %arg2: memref<10x25xbf16, #tpu.memory_space<vmem>>, %arg3: memref<10x1xf32, #tpu.memory_space<vmem>>, %arg4: memref<10x288xbf16, #tpu.memory_space<vmem>>) attributes {dimension_semantics = [#tpu.dimension_semantics<parallel>], iteration_bounds = array<i64: 1>, scalar_prefetch = 0 : i64, scratch_operands = 0 : i64, tpu.core_type = #tpu.core_type<tc>, window_params = [{transform_indices = @transform_0, window_bounds = array<i64: 4, 25, 288>}, {pipeline_mode = #tpu.pipeline_mode<synchronous>, transform_indices = @transform_1, window_bounds = array<i64: 10, 25>}, {pipeline_mode = #tpu.pipeline_mode<synchronous>, transform_indices = @transform_2, window_bounds = array<i64: 10, 1>}, {transform_indices = @transform_3, window_bounds = array<i64: 10, 288>}]} {
    %c0 = arith.constant 0 : index
    %c0_0 = arith.constant 0 : index
    %0 = vector.load %arg2[%c0, %c0_0] : memref<10x25xbf16, #tpu.memory_space<vmem>>, vector<10x25xbf16>
    %c0_1 = arith.constant 0 : index
    %c0_2 = arith.constant 0 : index
    %c0_3 = arith.constant 0 : index
    %1 = vector.load %arg1[%c0_1, %c0_2, %c0_3] : memref<4x25x288xbf16, #tpu.memory_space<vmem>>, vector<1x25x288xbf16>
    %2 = vector.shape_cast %1 : vector<1x25x288xbf16> to vector<25x288xbf16>
    %cst = arith.constant dense<0.000000e+00> : vector<10x288xf32>
    %3 = tpu.matmul %0, %2, %cst {dimension_numbers = #tpu.dot_dimension_numbers<[1], [0], [0], [1], [0, 0, 1, 1], [], []>} : vector<10x25xbf16>, vector<25x288xbf16>, vector<10x288xf32> -> vector<10x288xf32>
    %c1 = arith.constant 1 : index
    %c0_4 = arith.constant 0 : index
    %c0_5 = arith.constant 0 : index
    %4 = vector.load %arg1[%c1, %c0_4, %c0_5] : memref<4x25x288xbf16, #tpu.memory_space<vmem>>, vector<1x25x288xbf16>
    %5 = vector.shape_cast %4 : vector<1x25x288xbf16> to vector<25x288xbf16>
    %cst_6 = arith.constant dense<0.000000e+00> : vector<10x288xf32>
    %6 = tpu.matmul %0, %5, %cst_6 {dimension_numbers = #tpu.dot_dimension_numbers<[1], [0], [0], [1], [0, 0, 1, 1], [], []>} : vector<10x25xbf16>, vector<25x288xbf16>, vector<10x288xf32> -> vector<10x288xf32>
    %7 = arith.maximumf %3, %6 : vector<10x288xf32>
    %c2 = arith.constant 2 : index
    %c0_7 = arith.constant 0 : index
    %c0_8 = arith.constant 0 : index
    %8 = vector.load %arg1[%c2, %c0_7, %c0_8] : memref<4x25x288xbf16, #tpu.memory_space<vmem>>, vector<1x25x288xbf16>
    %9 = vector.shape_cast %8 : vector<1x25x288xbf16> to vector<25x288xbf16>
    %cst_9 = arith.constant dense<0.000000e+00> : vector<10x288xf32>
    %10 = tpu.matmul %0, %9, %cst_9 {dimension_numbers = #tpu.dot_dimension_numbers<[1], [0], [0], [1], [0, 0, 1, 1], [], []>} : vector<10x25xbf16>, vector<25x288xbf16>, vector<10x288xf32> -> vector<10x288xf32>
    %c3 = arith.constant 3 : index
    %c0_10 = arith.constant 0 : index
    %c0_11 = arith.constant 0 : index
    %11 = vector.load %arg1[%c3, %c0_10, %c0_11] : memref<4x25x288xbf16, #tpu.memory_space<vmem>>, vector<1x25x288xbf16>
    %12 = vector.shape_cast %11 : vector<1x25x288xbf16> to vector<25x288xbf16>
    %cst_12 = arith.constant dense<0.000000e+00> : vector<10x288xf32>
    %13 = tpu.matmul %0, %12, %cst_12 {dimension_numbers = #tpu.dot_dimension_numbers<[1], [0], [0], [1], [0, 0, 1, 1], [], []>} : vector<10x25xbf16>, vector<25x288xbf16>, vector<10x288xf32> -> vector<10x288xf32>
    %14 = arith.maximumf %10, %13 : vector<10x288xf32>
    %15 = arith.maximumf %7, %14 : vector<10x288xf32>
    %c0_13 = arith.constant 0 : index
    %c0_14 = arith.constant 0 : index
    %16 = vector.load %arg3[%c0_13, %c0_14] : memref<10x1xf32, #tpu.memory_space<vmem>>, vector<10x1xf32>
    %17 = vector.broadcast %16 : vector<10x1xf32> to vector<10x288xf32>
    %18 = arith.addf %15, %17 : vector<10x288xf32>
    %19 = math.tanh %18 : vector<10x288xf32>
    %20 = arith.truncf %19 : vector<10x288xf32> to vector<10x288xbf16>
    %c0_15 = arith.constant 0 : index
    %c0_16 = arith.constant 0 : index
    %21 = vector.load %arg4[%c0_15, %c0_16] : memref<10x288xbf16, #tpu.memory_space<vmem>>, vector<10x288xbf16>
    tpu.vector_store %arg4[%c0_15, %c0_16], %20 {strides = array<i32>} : memref<10x288xbf16, #tpu.memory_space<vmem>>, vector<10x288xbf16>,
    return
  }
  func.func @transform_0(%arg0: i32) -> (i32, i32, i32) {
    %c0_i32 = arith.constant 0 : i32
    %c0_i32_0 = arith.constant 0 : i32
    %c0_i32_1 = arith.constant 0 : i32
    return %c0_i32, %c0_i32_0, %arg0 : i32, i32, i32
  }
  func.func @transform_1(%arg0: i32) -> (i32, i32) {
    %c0_i32 = arith.constant 0 : i32
    %c0_i32_0 = arith.constant 0 : i32
    %c0_i32_1 = arith.constant 0 : i32
    return %c0_i32, %c0_i32_0 : i32, i32
  }
  func.func @transform_2(%arg0: i32) -> (i32, i32) {
    %c0_i32 = arith.constant 0 : i32
    %c0_i32_0 = arith.constant 0 : i32
    %c0_i32_1 = arith.constant 0 : i32
    return %c0_i32, %c0_i32_0 : i32, i32
  }
  func.func @transform_3(%arg0: i32) -> (i32, i32) {
    %c0_i32 = arith.constant 0 : i32
    %c0_i32_0 = arith.constant 0 : i32
    return %c0_i32, %arg0 : i32, i32
  }
}

module attributes {stable_mosaic.version = 11 : i64} {
  func.func @mlp_head_kernel(%arg0: i32, %arg1: memref<320x2xf32, #tpu.memory_space<vmem>>, %arg2: memref<50x320xf32, #tpu.memory_space<vmem>>, %arg3: memref<50x1xf32, #tpu.memory_space<vmem>>, %arg4: memref<10x50xf32, #tpu.memory_space<vmem>>, %arg5: memref<10x1xf32, #tpu.memory_space<vmem>>, %arg6: memref<10x2xf32, #tpu.memory_space<vmem>>) attributes {dimension_semantics = [#tpu.dimension_semantics<parallel>], iteration_bounds = array<i64: 1>, scalar_prefetch = 0 : i64, scratch_operands = 0 : i64, tpu.core_type = #tpu.core_type<tc>, window_params = [{transform_indices = @transform_0, window_bounds = array<i64: 320, 2>}, {pipeline_mode = #tpu.pipeline_mode<synchronous>, transform_indices = @transform_1, window_bounds = array<i64: 50, 320>}, {pipeline_mode = #tpu.pipeline_mode<synchronous>, transform_indices = @transform_2, window_bounds = array<i64: 50, 1>}, {pipeline_mode = #tpu.pipeline_mode<synchronous>, transform_indices = @transform_3, window_bounds = array<i64: 10, 50>}, {pipeline_mode = #tpu.pipeline_mode<synchronous>, transform_indices = @transform_4, window_bounds = array<i64: 10, 1>}, {transform_indices = @transform_5, window_bounds = array<i64: 10, 2>}]} {
    %c0 = arith.constant 0 : index
    %c0_0 = arith.constant 0 : index
    %0 = vector.load %arg2[%c0, %c0_0] : memref<50x320xf32, #tpu.memory_space<vmem>>, vector<50x320xf32>
    %c0_1 = arith.constant 0 : index
    %c0_2 = arith.constant 0 : index
    %1 = vector.load %arg1[%c0_1, %c0_2] : memref<320x2xf32, #tpu.memory_space<vmem>>, vector<320x2xf32>
    %cst = arith.constant dense<0.000000e+00> : vector<50x2xf32>
    %2 = tpu.matmul %0, %1, %cst {dimension_numbers = #tpu.dot_dimension_numbers<[1], [0], [0], [1], [0, 0, 1, 1], [], []>} : vector<50x320xf32>, vector<320x2xf32>, vector<50x2xf32> -> vector<50x2xf32>
    %c0_3 = arith.constant 0 : index
    %c0_4 = arith.constant 0 : index
    %3 = vector.load %arg3[%c0_3, %c0_4] : memref<50x1xf32, #tpu.memory_space<vmem>>, vector<50x1xf32>
    %4 = vector.broadcast %3 : vector<50x1xf32> to vector<50x2xf32>
    %5 = arith.addf %2, %4 : vector<50x2xf32>
    %6 = math.tanh %5 : vector<50x2xf32>
    %c0_5 = arith.constant 0 : index
    %c0_6 = arith.constant 0 : index
    %7 = vector.load %arg4[%c0_5, %c0_6] : memref<10x50xf32, #tpu.memory_space<vmem>>, vector<10x50xf32>
    %cst_7 = arith.constant dense<0.000000e+00> : vector<10x2xf32>
    %8 = tpu.matmul %7, %6, %cst_7 {dimension_numbers = #tpu.dot_dimension_numbers<[1], [0], [0], [1], [0, 0, 1, 1], [], []>} : vector<10x50xf32>, vector<50x2xf32>, vector<10x2xf32> -> vector<10x2xf32>
    %c0_8 = arith.constant 0 : index
    %c0_9 = arith.constant 0 : index
    %9 = vector.load %arg5[%c0_8, %c0_9] : memref<10x1xf32, #tpu.memory_space<vmem>>, vector<10x1xf32>
    %10 = vector.broadcast %9 : vector<10x1xf32> to vector<10x2xf32>
    %11 = arith.addf %8, %10 : vector<10x2xf32>
    %cst_10 = arith.constant dense<0xFF800000> : vector<2xf32>
    %12 = vector.multi_reduction <maximumf>, %11, %cst_10 [0] : vector<10x2xf32> to vector<2xf32>
    %13 = vector.shape_cast %12 : vector<2xf32> to vector<1x2xf32>
    %14 = vector.broadcast %13 : vector<1x2xf32> to vector<10x2xf32>
    %15 = arith.subf %11, %14 : vector<10x2xf32>
    %16 = math.exp %15 : vector<10x2xf32>
    %cst_11 = arith.constant dense<0.000000e+00> : vector<2xf32>
    %17 = vector.multi_reduction <add>, %16, %cst_11 [0] : vector<10x2xf32> to vector<2xf32>
    %18 = vector.shape_cast %17 : vector<2xf32> to vector<1x2xf32>
    %19 = math.log %18 : vector<1x2xf32>
    %20 = vector.broadcast %19 : vector<1x2xf32> to vector<10x2xf32>
    %21 = arith.subf %15, %20 : vector<10x2xf32>
    %c0_12 = arith.constant 0 : index
    %c0_13 = arith.constant 0 : index
    %22 = vector.load %arg6[%c0_12, %c0_13] : memref<10x2xf32, #tpu.memory_space<vmem>>, vector<10x2xf32>
    tpu.vector_store %arg6[%c0_12, %c0_13], %21 {strides = array<i32>} : memref<10x2xf32, #tpu.memory_space<vmem>>, vector<10x2xf32>,
    return
  }
  func.func @transform_0(%arg0: i32) -> (i32, i32) {
    %c0_i32 = arith.constant 0 : i32
    %c0_i32_0 = arith.constant 0 : i32
    return %c0_i32, %arg0 : i32, i32
  }
  func.func @transform_1(%arg0: i32) -> (i32, i32) {
    %c0_i32 = arith.constant 0 : i32
    %c0_i32_0 = arith.constant 0 : i32
    %c0_i32_1 = arith.constant 0 : i32
    return %c0_i32, %c0_i32_0 : i32, i32
  }
  func.func @transform_2(%arg0: i32) -> (i32, i32) {
    %c0_i32 = arith.constant 0 : i32
    %c0_i32_0 = arith.constant 0 : i32
    %c0_i32_1 = arith.constant 0 : i32
    return %c0_i32, %c0_i32_0 : i32, i32
  }
  func.func @transform_3(%arg0: i32) -> (i32, i32) {
    %c0_i32 = arith.constant 0 : i32
    %c0_i32_0 = arith.constant 0 : i32
    %c0_i32_1 = arith.constant 0 : i32
    return %c0_i32, %c0_i32_0 : i32, i32
  }
  func.func @transform_4(%arg0: i32) -> (i32, i32) {
    %c0_i32 = arith.constant 0 : i32
    %c0_i32_0 = arith.constant 0 : i32
    %c0_i32_1 = arith.constant 0 : i32
    return %c0_i32, %c0_i32_0 : i32, i32
  }
  func.func @transform_5(%arg0: i32) -> (i32, i32) {
    %c0_i32 = arith.constant 0 : i32
    %c0_i32_0 = arith.constant 0 : i32
    return %c0_i32, %arg0 : i32, i32
  }
}

module attributes {stable_mosaic.version = 11 : i64} {
  func.func @conv_pool_tanh_kernel(%arg0: i32, %arg1: memref<4x250x32xbf16, #tpu.memory_space<vmem>>, %arg2: memref<20x250xbf16, #tpu.memory_space<vmem>>, %arg3: memref<20x1xf32, #tpu.memory_space<vmem>>, %arg4: memref<20x32xbf16, #tpu.memory_space<vmem>>) attributes {dimension_semantics = [#tpu.dimension_semantics<parallel>], iteration_bounds = array<i64: 1>, scalar_prefetch = 0 : i64, scratch_operands = 0 : i64, tpu.core_type = #tpu.core_type<tc>, window_params = [{transform_indices = @transform_0, window_bounds = array<i64: 4, 250, 32>}, {pipeline_mode = #tpu.pipeline_mode<synchronous>, transform_indices = @transform_1, window_bounds = array<i64: 20, 250>}, {pipeline_mode = #tpu.pipeline_mode<synchronous>, transform_indices = @transform_2, window_bounds = array<i64: 20, 1>}, {transform_indices = @transform_3, window_bounds = array<i64: 20, 32>}]} {
    %c0 = arith.constant 0 : index
    %c0_0 = arith.constant 0 : index
    %0 = vector.load %arg2[%c0, %c0_0] : memref<20x250xbf16, #tpu.memory_space<vmem>>, vector<20x250xbf16>
    %c0_1 = arith.constant 0 : index
    %c0_2 = arith.constant 0 : index
    %c0_3 = arith.constant 0 : index
    %1 = vector.load %arg1[%c0_1, %c0_2, %c0_3] : memref<4x250x32xbf16, #tpu.memory_space<vmem>>, vector<1x250x32xbf16>
    %2 = vector.shape_cast %1 : vector<1x250x32xbf16> to vector<250x32xbf16>
    %cst = arith.constant dense<0.000000e+00> : vector<20x32xf32>
    %3 = tpu.matmul %0, %2, %cst {dimension_numbers = #tpu.dot_dimension_numbers<[1], [0], [0], [1], [0, 0, 1, 1], [], []>} : vector<20x250xbf16>, vector<250x32xbf16>, vector<20x32xf32> -> vector<20x32xf32>
    %c1 = arith.constant 1 : index
    %c0_4 = arith.constant 0 : index
    %c0_5 = arith.constant 0 : index
    %4 = vector.load %arg1[%c1, %c0_4, %c0_5] : memref<4x250x32xbf16, #tpu.memory_space<vmem>>, vector<1x250x32xbf16>
    %5 = vector.shape_cast %4 : vector<1x250x32xbf16> to vector<250x32xbf16>
    %cst_6 = arith.constant dense<0.000000e+00> : vector<20x32xf32>
    %6 = tpu.matmul %0, %5, %cst_6 {dimension_numbers = #tpu.dot_dimension_numbers<[1], [0], [0], [1], [0, 0, 1, 1], [], []>} : vector<20x250xbf16>, vector<250x32xbf16>, vector<20x32xf32> -> vector<20x32xf32>
    %7 = arith.maximumf %3, %6 : vector<20x32xf32>
    %c2 = arith.constant 2 : index
    %c0_7 = arith.constant 0 : index
    %c0_8 = arith.constant 0 : index
    %8 = vector.load %arg1[%c2, %c0_7, %c0_8] : memref<4x250x32xbf16, #tpu.memory_space<vmem>>, vector<1x250x32xbf16>
    %9 = vector.shape_cast %8 : vector<1x250x32xbf16> to vector<250x32xbf16>
    %cst_9 = arith.constant dense<0.000000e+00> : vector<20x32xf32>
    %10 = tpu.matmul %0, %9, %cst_9 {dimension_numbers = #tpu.dot_dimension_numbers<[1], [0], [0], [1], [0, 0, 1, 1], [], []>} : vector<20x250xbf16>, vector<250x32xbf16>, vector<20x32xf32> -> vector<20x32xf32>
    %c3 = arith.constant 3 : index
    %c0_10 = arith.constant 0 : index
    %c0_11 = arith.constant 0 : index
    %11 = vector.load %arg1[%c3, %c0_10, %c0_11] : memref<4x250x32xbf16, #tpu.memory_space<vmem>>, vector<1x250x32xbf16>
    %12 = vector.shape_cast %11 : vector<1x250x32xbf16> to vector<250x32xbf16>
    %cst_12 = arith.constant dense<0.000000e+00> : vector<20x32xf32>
    %13 = tpu.matmul %0, %12, %cst_12 {dimension_numbers = #tpu.dot_dimension_numbers<[1], [0], [0], [1], [0, 0, 1, 1], [], []>} : vector<20x250xbf16>, vector<250x32xbf16>, vector<20x32xf32> -> vector<20x32xf32>
    %14 = arith.maximumf %10, %13 : vector<20x32xf32>
    %15 = arith.maximumf %7, %14 : vector<20x32xf32>
    %c0_13 = arith.constant 0 : index
    %c0_14 = arith.constant 0 : index
    %16 = vector.load %arg3[%c0_13, %c0_14] : memref<20x1xf32, #tpu.memory_space<vmem>>, vector<20x1xf32>
    %17 = vector.broadcast %16 : vector<20x1xf32> to vector<20x32xf32>
    %18 = arith.addf %15, %17 : vector<20x32xf32>
    %19 = math.tanh %18 : vector<20x32xf32>
    %20 = arith.truncf %19 : vector<20x32xf32> to vector<20x32xbf16>
    %c0_15 = arith.constant 0 : index
    %c0_16 = arith.constant 0 : index
    %21 = vector.load %arg4[%c0_15, %c0_16] : memref<20x32xbf16, #tpu.memory_space<vmem>>, vector<20x32xbf16>
    tpu.vector_store %arg4[%c0_15, %c0_16], %20 {strides = array<i32>} : memref<20x32xbf16, #tpu.memory_space<vmem>>, vector<20x32xbf16>,
    return
  }
  func.func @transform_0(%arg0: i32) -> (i32, i32, i32) {
    %c0_i32 = arith.constant 0 : i32
    %c0_i32_0 = arith.constant 0 : i32
    %c0_i32_1 = arith.constant 0 : i32
    return %c0_i32, %c0_i32_0, %arg0 : i32, i32, i32
  }
  func.func @transform_1(%arg0: i32) -> (i32, i32) {
    %c0_i32 = arith.constant 0 : i32
    %c0_i32_0 = arith.constant 0 : i32
    %c0_i32_1 = arith.constant 0 : i32
    return %c0_i32, %c0_i32_0 : i32, i32
  }
  func.func @transform_2(%arg0: i32) -> (i32, i32) {
    %c0_i32 = arith.constant 0 : i32
    %c0_i32_0 = arith.constant 0 : i32
    %c0_i32_1 = arith.constant 0 : i32
    return %c0_i32, %c0_i32_0 : i32, i32
  }
  func.func @transform_3(%arg0: i32) -> (i32, i32) {
    %c0_i32 = arith.constant 0 : i32
    %c0_i32_0 = arith.constant 0 : i32
    return %c0_i32, %arg0 : i32, i32
  }
}

</mosaic_0001>

<bundles_post_ra>
// kernel: net_forward.3
= control target key start
LH: loop header
LB: loop body
LE: loop exit
PB: predicated region body
PF: predicated region fallthrough
CT: control target
= control target key end

     0   :  { %vm63_vm0 = vcmask 1043456   ;;  %vm64_vm1 = vcmask 1044480   ;;  %v784_v0 = vmov 0.0   ;;  %v785_v2 = vmov 65535   ;;  %s954_s0 = inlined_call_operand.vmem [shape: bf16[4,25,288], index: 0, kind: input, shape index: {}]   ;;  %s955_s1 = inlined_call_operand.vmem [shape: bf16[10,25], index: 1, kind: input, shape index: {}]   ;;  %s956_s2 = inlined_call_operand.vmem [shape: f32[10,1], index: 2, kind: input, shape index: {}]   ;;  %s957_s3 = inlined_call_operand.vmem [shape: bf16[10,288], index: 3, kind: output, shape index: {}]  }
   0x1   :  { %702 = vmatprep.subr.bf16.mxu1 %v784_v0  ;;  %v739_v1 = vld [vmem:[%s954_s0 + $0x4] ss:$12 sps:$4 sm:$0xff]   ;;  %v65_v3 = vsel %vm63_vm0, 4294967295, %v785_v2  ;;  %v741_v4 = vld [vmem:[%s954_s0 + $0x8] ss:$12 sps:$4 sm:$0xff]   ;;  %vm786_vm2 = vmmov 0  }
   0x2   :  { %706 = vmatprep.mubr.msk.bf16.mxu1 %vm786_vm2, %v784_v0  ;;  %76 = vmatprep.subr.bf16.mxu0 %v739_v1  ;;  %v742_v5 = vld [vmem:[%s954_s0] ss:$12 sps:$4 sm:$0xff]   ;;  %v820_v6 = vsel %vm64_vm1, %v65_v3, 0  ;;  %v743_v7 = vld [vmem:[%s954_s0 + $0x1c] ss:$12 sps:$4 sm:$0x1f]  }
   0x3   :  { %703 = vmatpush3.bf16.msra.mxu1 %v741_v4  ;;  %77 = vmatpush1.bf16.msra.mxu0 %v742_v5  ;;  %v745_v8 = vld [vmem:[%s954_s0 + $0x20] ss:$12 sps:$4 sm:$0x1f]   ;;  %v71_v9 = vand.u32 %v743_v7, %v820_v6  ;;  %v746_v10 = vld [vmem:[%s954_s0 + $0x18] ss:$12 sps:$4 sm:$0x1f]  }
   0x4   :  { %704 = vmatprep.subr.bf16.mxu1 %v784_v0  ;;  %v787_v11 = vmov 0   ;;  %v74_v12 = vand.u32 %v745_v8, %v820_v6  ;;  %v839_v13 = vld [vmem:[%s955_s1] sm:$0x1f]   ;;  %v68_v14 = vand.u32 %v746_v10, %v820_v6  ;;  %v748_v15 = vld [vmem:[%s954_s0 + $0x30] ss:$12 sps:$4 sm:$0xff]   ;;  %vm59_vm3 = vcmask 203776  }
   0x5   :  { %108 = vmatprep.mubr.bf16.mxu0 %v787_v11  ;;  %738 = vset.pattern.permute.xlu0 %v787_v11  ;;  %v750_v16 = vld [vmem:[%s954_s0 + $0x34] ss:$12 sps:$4 sm:$0xff]   ;;  %v751_v17 = vld [vmem:[%s954_s0 + $0x38] ss:$12 sps:$4 sm:$0xff]   ;;  %v572_v38 = vld [vmem:[%s956_s2 + $0x8] sm:$0x3] }
   0x6   :  { %78 = vmatprep.subr.bf16.mxu0 %v71_v9  ;;  %v752_v18 = vld [vmem:[%s954_s0 + $0x48] ss:$12 sps:$4 sm:$0x1f]   ;;  %v754_v19 = vld [vmem:[%s954_s0 + $0x4c] ss:$12 sps:$4 sm:$0x1f]  }
   0x7   :  { %705 = vmatpush3.bf16.msra.mxu1 %v74_v12  ;;  %79 = vmatpush1.bf16.msra.mxu0 %v68_v14  ;;  %v755_v20 = vld [vmem:[%s954_s0 + $0x50] ss:$12 sps:$4 sm:$0x1f]   ;;  %v202_v21 = vand.u32 %v754_v19, %v820_v6  ;;  %v199_v23 = vand.u32 %v752_v18, %v820_v6  ;;  %v760_v26 = vld [vmem:[%s954_s0 + $0x78] ss:$12 sps:$4 sm:$0x1f]  }
   0x8   :  { %710 = vmatprep.subr.bf16.mxu1 %v784_v0  ;;  %207 = vmatprep.subr.bf16.mxu0 %v750_v16  ;;  %v205_v22 = vand.u32 %v755_v20, %v820_v6  ;;  %v758_v24 = vld [vmem:[%s954_s0 + $0x64] ss:$12 sps:$4 sm:$0xff]   ;;  %v762_v25 = vld [vmem:[%s954_s0 + $0x7c] ss:$12 sps:$4 sm:$0x1f]   ;;  %v336_v33 = vand.u32 %v760_v26, %v820_v6  ;;  %vm616_vm4 = vcmask 257024  }
   0x9   :  { %v759_v27 = vld [vmem:[%s954_s0 + $0x68] ss:$12 sps:$4 sm:$0xff]   ;;  %v763_v28 = vld [vmem:[%s954_s0 + $0x80] ss:$12 sps:$4 sm:$0x1f]   ;;  %v339_v30 = vand.u32 %v762_v25, %v820_v6  ;;  %vm619_vm5 = vcmask 253952  }
   0xa   :  { %707 = vmatmul.mubr.msk.bf16.vlgmr.msra.gmra.mrb[0].mxu1 %vm59_vm3, %v839_v13  ;;  %632 = vmatmul.mubr.msk.bf16.vlgmr.msra.gmra.mrb[0].mxu0 %vm59_vm3, %v839_v13  ;;  %v756_v29 = vld [vmem:[%s954_s0 + $0x60] ss:$12 sps:$4 sm:$0xff]   ;;  %v342_v31 = vand.u32 %v763_v28, %v820_v6  ;;  %v767_v36 = vld [vmem:[%s954_s0 + $0x98] ss:$12 sps:$4 sm:$0xff]   ;;  %v764_v39 = vld [vmem:[%s954_s0 + $0x90] ss:$12 sps:$4 sm:$0xff]  }
   0xb   :  { %711 = vmatpush3.bf16.msra.mxu1 %v751_v17  ;;  %208 = vmatpush1.bf16.msra.mxu0 %v748_v15  ;;  %v571_v32 = vld [vmem:[%s956_s2] sm:$0xff]  ;;  %v770_v35 = vld [vmem:[%s954_s0 + $0xac] ss:$12 sps:$4 sm:$0x1f]  }
   0xc   :  { %712 = vmatprep.subr.bf16.mxu1 %v784_v0  ;;  %209 = vmatprep.subr.bf16.mxu0 %v202_v21  ;;  %v766_v34 = vld [vmem:[%s954_s0 + $0x94] ss:$12 sps:$4 sm:$0xff]   ;;  %v771_v37 = vld [vmem:[%s954_s0 + $0xb0] ss:$12 sps:$4 sm:$0x1f]   ;;  %v470_v41 = vand.u32 %v770_v35, %v820_v6 }
   0xd   :  { %714 = vmatprep.mubr.msk.bf16.mxu1 %vm786_vm2, %v784_v0  ;;  %239 = vmatprep.mubr.bf16.mxu0 %v787_v11  ;;  %v768_v40 = vld [vmem:[%s954_s0 + $0xa8] ss:$12 sps:$4 sm:$0x1f]   ;;  %v473_v42 = vand.u32 %v771_v37, %v820_v6 }
   0xe   :  { %575 = vperm.xlu0 %738, %v571_v32   ;;  %v467_v43 = vand.u32 %v768_v40, %v820_v6 }
   0xf   :  { %713 = vmatpush3.bf16.msra.mxu1 %v205_v22  ;;  %210 = vmatpush1.bf16.msra.mxu0 %v199_v23 }
  0x10   :  { %718 = vmatprep.subr.bf16.mxu1 %v784_v0  ;;  %344 = vmatprep.subr.bf16.mxu0 %v758_v24 }
  0x12   :  { %715 = vmatmul.mubr.msk.bf16.vlgmr.msra.gmra.mrb[4].mxu1 %vm59_vm3, %v839_v13  ;;  %648 = vmatmul.mubr.msk.bf16.vlgmr.msra.gmra.mrb[4].mxu0 %vm59_vm3, %v839_v13 }
  0x13   :  { %719 = vmatpush3.bf16.msra.mxu1 %v759_v27  ;;  %345 = vmatpush1.bf16.msra.mxu0 %v756_v29 }
  0x14   :  { %720 = vmatprep.subr.bf16.mxu1 %v784_v0  ;;  %346 = vmatprep.subr.bf16.mxu0 %v339_v30 }
  0x15   :  { %722 = vmatprep.mubr.msk.bf16.mxu1 %vm786_vm2, %v784_v0  ;;  %376 = vmatprep.mubr.bf16.mxu0 %v787_v11 }
  0x16   :  { %580 = vperm.xlu0 %738, %v572_v38  }
  0x17   :  { %721 = vmatpush3.bf16.msra.mxu1 %v342_v31  ;;  %347 = vmatpush1.bf16.msra.mxu0 %v336_v33 }
  0x18   :  { %726 = vmatprep.subr.bf16.mxu1 %v784_v0  ;;  %475 = vmatprep.subr.bf16.mxu0 %v766_v34 }
  0x1a   :  { %723 = vmatmul.mubr.msk.bf16.vlgmr.msra.gmra.mrb[8].mxu1 %vm59_vm3, %v839_v13  ;;  %664 = vmatmul.mubr.msk.bf16.vlgmr.msra.gmra.mrb[8].mxu0 %vm59_vm3, %v839_v13 }
  0x1b   :  { %727 = vmatpush3.bf16.msra.mxu1 %v767_v36  ;;  %476 = vmatpush1.bf16.msra.mxu0 %v764_v39 }
  0x1c   :  { %728 = vmatprep.subr.bf16.mxu1 %v784_v0  ;;  %477 = vmatprep.subr.bf16.mxu0 %v470_v41 }
  0x1d   :  { %730 = vmatprep.mubr.msk.bf16.mxu1 %vm786_vm2, %v784_v0  ;;  %507 = vmatprep.mubr.bf16.mxu0 %v787_v11 }
  0x1f   :  { %729 = vmatpush3.bf16.msra.mxu1 %v473_v42  ;;  %478 = vmatpush1.bf16.msra.mxu0 %v467_v43 }
  0x22   :  { %731 = vmatmul.mubr.msk.bf16.vlgmr.msra.gmra.mrb[12].mxu1 %vm59_vm3, %v839_v13  ;;  %680 = vmatmul.mubr.msk.bf16.vlgmr.msra.gmra.mrb[12].mxu0 %vm59_vm3, %v839_v13 }
  0x8d   :  { %v576_v11 = vpop.permute.xlu0 %575 }
  0x95   :  { %v581_v34 = vpop.permute.xlu0 %580 }
  0xdd   :  { %v153_v44 = vpop.f32.mrb[0].mxu1  ;;  %v110_v45 = vpop.f32.mrb[0].mxu0 }
  0xde   :  { %v708_v46 = vpop.f32.mrb[1].mxu1  ;;  %v112_v47 = vpop.f32.mrb[1].mxu0 }
  0xdf   :  { %v156_v48 = vpop.f32.mrb[2].mxu1  ;;  %v114_v49 = vpop.f32.mrb[2].mxu0 }
  0xe0   :  { %v709_v50 = vpop.f32.mrb[3].mxu1  ;;  %v116_v51 = vpop.f32.mrb[3].mxu0 }
  0xe5   :  { %v284_v52 = vpop.f32.mrb[4].mxu1  ;;  %v241_v54 = vpop.f32.mrb[4].mxu0 }
  0xe6   :  { %v293_v53 = vmax.f32 %v153_v44, %v284_v52  ;;  %v716_v55 = vpop.f32.mrb[5].mxu1  ;;  %v291_v56 = vmax.f32 %v110_v45, %v241_v54  ;;  %v243_v57 = vpop.f32.mrb[5].mxu0 }
  0xe7   :  { %v287_v58 = vpop.f32.mrb[6].mxu1  ;;  %v292_v59 = vmax.f32 %v112_v47, %v243_v57  ;;  %v245_v61 = vpop.f32.mrb[6].mxu0 }
  0xe8   :  { %v296_v60 = vmax.f32 %v156_v48, %v287_v58  ;;  %v717_v62 = vpop.f32.mrb[7].mxu1  ;;  %v294_v63 = vmax.f32 %v114_v49, %v245_v61  ;;  %v247_v0 = vpop.f32.mrb[7].mxu0 }
  0xe9   :  { %v295_v1 = vmax.f32 %v116_v51, %v247_v0 }
  0xed   :  { %v421_v2 = vpop.f32.mrb[8].mxu1  ;;  %v378_v3 = vpop.f32.mrb[8].mxu0 }
  0xee   :  { %v724_v4 = vpop.f32.mrb[9].mxu1  ;;  %v380_v5 = vpop.f32.mrb[9].mxu0 }
  0xef   :  { %v424_v6 = vpop.f32.mrb[10].mxu1  ;;  %v382_v7 = vpop.f32.mrb[10].mxu0 }
  0xf0   :  { %v725_v8 = vpop.f32.mrb[11].mxu1  ;;  %v384_v9 = vpop.f32.mrb[11].mxu0 }
  0xf5   :  { %v552_v10 = vpop.f32.mrb[12].mxu1  ;;  %v509_v13 = vpop.f32.mrb[12].mxu0 }
  0xf6   :  { %v561_v12 = vmax.f32 %v421_v2, %v552_v10  ;;  %v732_v14 = vpop.f32.mrb[13].mxu1  ;;  %v559_v15 = vmax.f32 %v378_v3, %v509_v13  ;;  %v511_v16 = vpop.f32.mrb[13].mxu0 }
  0xf7   :  { %v555_v17 = vpop.f32.mrb[14].mxu1  ;;  %v560_v19 = vmax.f32 %v380_v5, %v511_v16  ;;  %v513_v21 = vpop.f32.mrb[14].mxu0 }
  0xf8   :  { %v567_v18 = vmax.f32 %v293_v53, %v561_v12  ;;  %v564_v20 = vmax.f32 %v424_v6, %v555_v17  ;;  %v733_v22 = vpop.f32.mrb[15].mxu1  ;;  %v565_v23 = vmax.f32 %v291_v56, %v559_v15  ;;  %v562_v24 = vmax.f32 %v382_v7, %v513_v21  ;;  %v515_v25 = vpop.f32.mrb[15].mxu0 }
  0xf9   :  { %v566_v27 = vmax.f32 %v292_v59, %v560_v19  ;;  %v563_v29 = vmax.f32 %v384_v9, %v515_v25 }
  0xfa   :  { %v585_v26 = vadd.f32 %v576_v11, %v567_v18  ;;  %v570_v28 = vmax.f32 %v296_v60, %v564_v20  ;;  %v583_v30 = vadd.f32 %v576_v11, %v565_v23  ;;  %v568_v31 = vmax.f32 %v294_v63, %v562_v24 }
  0xfb   :  { %v584_v32 = vadd.f32 %v576_v11, %v566_v27  ;;  %v569_v33 = vmax.f32 %v295_v1, %v563_v29 }
  0xfc   :  { %772 = vtanh.f32 %v585_v26  ;;  %v586_v35 = vadd.f32 %v581_v34, %v568_v31  ;;  %v588_v36 = vadd.f32 %v581_v34, %v570_v28 }
  0xfd   :  { %774 = vtanh.f32 %v583_v30  ;;  %v587_v37 = vadd.f32 %v581_v34, %v569_v33 }
  0xfe   :  { %776 = vtanh.f32 %v584_v32 }
  0xff   :  { %778 = vtanh.f32 %v586_v35 }
 0x100   :  { %780 = vtanh.f32 %v587_v37 }
 0x101   :  { %782 = vtanh.f32 %v588_v36 }
 0x106   :  { %v773_v38 = vpop.eup %772 }
 0x107   :  { %v775_v39 = vpop.eup %774  ;;  %v687_v40 = vpack.c.bf16 %v773_v38, %v773_v38 }
 0x108   :  { %v777_v41 = vpop.eup %776 }
 0x109   :  { %v779_v42 = vpop.eup %778  ;;  %617 = vst.msk [vmem:[%s957_s3 + $0x8] sm:$0xf] %vm616_vm4, %v687_v40  ;;  %v686_v43 = vpack.c.bf16 %v777_v41, %v775_v39 }
 0x10a   :  { %v781_v44 = vpop.eup %780 }
 0x10b   :  { %v783_v45 = vpop.eup %782  ;;  %615 = vst [vmem:[%s957_s3] sm:$0xff] %v686_v43  ;;  %v688_v46 = vpack.c.bf16 %v781_v44, %v779_v42 }
 0x10c   :  { %v689_v47 = vpack.c.bf16 %v783_v45, %v783_v45 }
 0x10d   :  { %618 = vst [vmem:[%s957_s3 + $0xc] sm:$0x11] %v688_v46 }
 0x10e   :  { %620 = vst.msk [vmem:[%s957_s3 + $0x14] sm:$0x1] %vm619_vm5, %v689_v47 }

// kernel: net_forward.5
= control target key start
LH: loop header
LB: loop body
LE: loop exit
PB: predicated region body
PF: predicated region fallthrough
CT: control target
= control target key end

     0   :  { %v711_v3 = vmov 0.0|0.0   ;;  %vm712_vm0 = vmmov 0   ;;  %v713_v4 = vmov 0.0   ;;  %v714_v9 = vmov 0   ;;  %s1000_s0 = inlined_call_operand.vmem [shape: f32[320,2], index: 0, kind: input, shape index: {}]   ;;  %s1001_s1 = inlined_call_operand.vmem [shape: f32[50,320], index: 1, kind: input, shape index: {}]   ;;  %s1002_s2 = inlined_call_operand.vmem [shape: f32[50,1], index: 2, kind: input, shape index: {}]   ;;  %s1003_s4 = inlined_call_operand.vmem [shape: f32[10,1], index: 4, kind: input, shape index: {}]   ;;  %s1004_s3 = inlined_call_operand.vmem [shape: f32[10,50], index: 3, kind: input, shape index: {}]   ;;  %s1005_s5 = inlined_call_operand.vmem [shape: f32[10,2], index: 5, kind: output, shape index: {}]  }
   0x1   :  { %v57_v0 = vld [vmem:[%s1000_s0 + $0x80] sm:$0xff]  ;;  %v58_v1 = vld [vmem:[%s1000_s0 + $0x88] sm:$0xff]  ;;  %661 = vmatprep.subr.bf16.mxu1 %v711_v3  ;;  %591 = vmatprep.mubr.msk.f32.mxu1 %vm712_vm0, %v713_v4  ;;  %v59_v7 = vld [vmem:[%s1000_s0 + $0x90] sm:$0xff]  ;;  %vm123_vm1 = vcmask 523264   ;;  %vm366_vm2 = vcmask 408576   ;;  %vm373_vm3 = vcmask 1041408  }
   0x2   :  { %v41_v2 = vld [vmem:[%s1000_s0] sm:$0xff]  ;;  %v629_v5 = vpack.c.bf16 %v58_v1, %v57_v0  ;;  %v42_v6 = vld [vmem:[%s1000_s0 + $0x8] sm:$0xff]  ;;  %v60_v8 = vld [vmem:[%s1000_s0 + $0x98] sm:$0xff]  ;;  %689 = vset.pattern.permute.xlu0 %v714_v9  ;;  %690 = vset.pattern.permute.xlu1 %v714_v9  ;;  %vm454_vm4 = vcmask 9216   ;;  %vm452_vm5 = vcmask 15360  }
   0x3   :  { %v631_v10 = vpack.c.bf16 %v42_v6, %v41_v2  ;;  %v633_v11 = vpack.c.bf16 %v60_v8, %v59_v7  ;;  %v43_v12 = vld [vmem:[%s1000_s0 + $0x10] sm:$0xff]  ;;  %v44_v13 = vld [vmem:[%s1000_s0 + $0x18] sm:$0xff]  ;;  %v61_v14 = vld [vmem:[%s1000_s0 + $0xa0] sm:$0xff] }
   0x4   :  { %630 = vmatprep.subr.bf16.mxu0 %v629_v5  ;;  %v62_v15 = vld [vmem:[%s1000_s0 + $0xa8] sm:$0xff]  ;;  %v635_v16 = vpack.c.bf16 %v44_v13, %v43_v12  ;;  %v45_v18 = vld [vmem:[%s1000_s0 + $0x20] sm:$0xff]  ;;  %v63_v20 = vld [vmem:[%s1000_s0 + $0xb0] sm:$0xff] }
   0x5   :  { %632 = vmatpush3.bf16.msra.mxu0 %v631_v10  ;;  %v637_v17 = vpack.c.bf16 %v62_v15, %v61_v14  ;;  %v46_v19 = vld [vmem:[%s1000_s0 + $0x28] sm:$0xff]  ;;  %v64_v21 = vld [vmem:[%s1000_s0 + $0xb8] sm:$0xff]  ;;  %v73_v23 = vld [vmem:[%s1000_s0 + $0x100] sm:$0xff] }
   0x6   :  { %634 = vmatprep.subr.bf16.mxu0 %v633_v11  ;;  %v639_v22 = vpack.c.bf16 %v46_v19, %v45_v18  ;;  %v74_v24 = vld [vmem:[%s1000_s0 + $0x108] sm:$0xff]  ;;  %v641_v25 = vpack.c.bf16 %v64_v21, %v63_v20  ;;  %v47_v26 = vld [vmem:[%s1000_s0 + $0x30] sm:$0xff]  ;;  %v48_v27 = vld [vmem:[%s1000_s0 + $0x38] sm:$0xff] }
   0x7   :  { %v65_v28 = vld [vmem:[%s1000_s0 + $0xc0] sm:$0xff]  ;;  %v662_v29 = vpack.c.bf16 %v74_v24, %v73_v23  ;;  %v66_v30 = vld [vmem:[%s1000_s0 + $0xc8] sm:$0xff]  ;;  %v75_v31 = vld [vmem:[%s1000_s0 + $0x110] sm:$0xff]  ;;  %v643_v34 = vpack.c.bf16 %v48_v27, %v47_v26 }
   0x8   :  { %v76_v32 = vld [vmem:[%s1000_s0 + $0x118] sm:$0xff]  ;;  %v77_v35 = vld [vmem:[%s1000_s0 + $0x120] sm:$0xff]  ;;  %v78_v36 = vld [vmem:[%s1000_s0 + $0x128] sm:$0xff]  ;;  %v645_v38 = vpack.c.bf16 %v66_v30, %v65_v28 }
   0x9   :  { %636 = vmatpush3.bf16.msra.mxu0 %v635_v16  ;;  %663 = vmatpush3.bf16.msra.mxu1 %v662_v29  ;;  %v665_v33 = vpack.c.bf16 %v76_v32, %v75_v31  ;;  %v21_v37 = vld [vmem:[%s1001_s1 + $0x8] sm:$0xff]  ;;  %v49_v39 = vld [vmem:[%s1000_s0 + $0x40] sm:$0xff]  ;;  %v67_v41 = vld [vmem:[%s1000_s0 + $0xd0] sm:$0xff]  ;;  %v668_v43 = vpack.c.bf16 %v78_v36, %v77_v35 }
   0xa   :  { %638 = vmatprep.subr.bf16.mxu0 %v637_v17  ;;  %664 = vmatprep.subr.bf16.mxu1 %v711_v3  ;;  %v50_v40 = vld [vmem:[%s1000_s0 + $0x48] sm:$0xff]  ;;  %v68_v42 = vld [vmem:[%s1000_s0 + $0xd8] sm:$0xff]  ;;  %v79_v45 = vld [vmem:[%s1000_s0 + $0x130] sm:$0xff] }
   0xb   :  { %209 = vmatprep.mubr.f32.mxu0 %v21_v37  ;;  %v647_v44 = vpack.c.bf16 %v50_v40, %v49_v39  ;;  %v80_v46 = vld [vmem:[%s1000_s0 + $0x138] sm:$0xff]  ;;  %v649_v47 = vpack.c.bf16 %v68_v42, %v67_v41  ;;  %v51_v48 = vld [vmem:[%s1000_s0 + $0x50] sm:$0xff]  ;;  %v69_v50 = vld [vmem:[%s1000_s0 + $0xe0] sm:$0xff] }
   0xc   :  { %v52_v49 = vld [vmem:[%s1000_s0 + $0x58] sm:$0xff]  ;;  %v70_v51 = vld [vmem:[%s1000_s0 + $0xe8] sm:$0xff]  ;;  %v671_v52 = vpack.c.bf16 %v80_v46, %v79_v45  ;;  %v81_v54 = vld [vmem:[%s1002_s2] sm:$0xff] }
   0xd   :  { %640 = vmatpush3.bf16.msra.mxu0 %v639_v22  ;;  %666 = vmatpush3.bf16.msra.mxu1 %v665_v33  ;;  %v651_v53 = vpack.c.bf16 %v52_v49, %v51_v48  ;;  %v653_v55 = vpack.c.bf16 %v70_v51, %v69_v50  ;;  %v53_v56 = vld [vmem:[%s1000_s0 + $0x60] sm:$0xff]  ;;  %v54_v57 = vld [vmem:[%s1000_s0 + $0x68] sm:$0xff]  ;;  %v83_v58 = vld [vmem:[%s1002_s2 + $0x10] sm:$0xff] }
   0xe   :  { %642 = vmatprep.subr.bf16.mxu0 %v641_v25  ;;  %667 = vmatprep.subr.bf16.mxu1 %v711_v3  ;;  %v71_v59 = vld [vmem:[%s1000_s0 + $0xf0] sm:$0xff]  ;;  %v72_v60 = vld [vmem:[%s1000_s0 + $0xf8] sm:$0xff]  ;;  %v82_v61 = vld [vmem:[%s1002_s2 + $0x8] sm:$0xff]  ;;  %v655_v0 = vpack.c.bf16 %v54_v57, %v53_v56 }
   0xf   :  { %90 = vperm.xlu0 %689, %v81_v54   ;;  %100 = vperm.xlu1 %690, %v83_v58   ;;  %v22_v62 = vld [vmem:[%s1001_s1 + $0x10] sm:$0xff]  ;;  %v84_v63 = vld [vmem:[%s1002_s2 + $0x18] sm:$0xff]  ;;  %v657_v1 = vpack.c.bf16 %v72_v60, %v71_v59  ;;  %v85_v5 = vld [vmem:[%s1002_s2 + $0x20] sm:$0xff] }
  0x10   :  { %v55_v2 = vld [vmem:[%s1000_s0 + $0x70] sm:$0xff]  ;;  %v25_v6 = vld [vmem:[%s1001_s1 + $0x28] sm:$0xff]  ;;  %v28_v10 = vld [vmem:[%s1001_s1 + $0x40] sm:$0xff] }
  0x11   :  { %644 = vmatpush3.bf16.msra.mxu0 %v643_v34  ;;  %669 = vmatpush3.bf16.msra.mxu1 %v668_v43  ;;  %v86_v7 = vld [vmem:[%s1002_s2 + $0x28] sm:$0xff]  ;;  %v87_v9 = vld [vmem:[%s1002_s2 + $0x30] sm:$0x3]  ;;  %v354_v11 = vld [vmem:[%s1003_s4] sm:$0xff] }
  0x12   :  { %646 = vmatprep.subr.bf16.mxu0 %v645_v38  ;;  %670 = vmatprep.subr.bf16.mxu1 %v711_v3  ;;  %v56_v3 = vld [vmem:[%s1000_s0 + $0x78] sm:$0xff]  ;;  %v20_v12 = vld [vmem:[%s1001_s1] sm:$0xff]  ;;  %v355_v14 = vld [vmem:[%s1003_s4 + $0x8] sm:$0x3] }
  0x13   :  { %95 = vperm.xlu0 %689, %v82_v61   ;;  %105 = vperm.xlu1 %690, %v84_v63   ;;  %v659_v8 = vpack.c.bf16 %v56_v3, %v55_v2  ;;  %v24_v13 = vld [vmem:[%s1001_s1 + $0x20] sm:$0xff]  ;;  %v31_v15 = vld [vmem:[%s1001_s1 + $0x58] sm:$0xff]  ;;  %v34_v18 = vld [vmem:[%s1001_s1 + $0x70] sm:$0xff] }
  0x14   :  { %v23_v16 = vld [vmem:[%s1001_s1 + $0x18] sm:$0xff]  ;;  %v26_v19 = vld [vmem:[%s1001_s1 + $0x30] sm:$0xff]  ;;  %v37_v21 = vld [vmem:[%s1001_s1 + $0x88] sm:$0xff] }
  0x15   :  { %648 = vmatpush3.bf16.msra.mxu0 %v647_v44  ;;  %672 = vmatpush3.bf16.msra.mxu1 %v671_v52  ;;  %v27_v17 = vld [vmem:[%s1001_s1 + $0x38] sm:$0xff]  ;;  %v30_v20 = vld [vmem:[%s1001_s1 + $0x50] sm:$0xff]  ;;  %v29_v22 = vld [vmem:[%s1001_s1 + $0x48] sm:$0xff] }
  0x16   :  { %650 = vmatprep.subr.bf16.mxu0 %v649_v47  ;;  %v33_v23 = vld [vmem:[%s1001_s1 + $0x68] sm:$0xff]  ;;  %v40_v24 = vld [vmem:[%s1001_s1 + $0xa0] sm:$0x3]  ;;  %v39_v27 = vld [vmem:[%s1001_s1 + $0x98] sm:$0x3] }
  0x17   :  { %110 = vperm.xlu0 %689, %v85_v5   ;;  %115 = vperm.xlu1 %690, %v86_v7   ;;  %v32_v25 = vld [vmem:[%s1001_s1 + $0x60] sm:$0xff]  ;;  %v38_v28 = vld [vmem:[%s1001_s1 + $0x90] sm:$0x3] }
  0x18   :  { %592 = vmatmul.mubr.msk.f32.vlgmr.msra.gmra.mrb[0].mxu1 %vm123_vm1, %v22_v62  ;;  %v36_v26 = vld [vmem:[%s1001_s1 + $0x80] sm:$0xff] }
  0x19   :  { %652 = vmatpush3.bf16.msra.mxu0 %v651_v53  ;;  %594 = vmatprep.mubr.msk.f32.mxu1 %vm712_vm0, %v713_v4  ;;  %v352_v29 = vld [vmem:[%s1004_s3] sm:$0xff] }
  0x1a   :  { %654 = vmatprep.subr.bf16.mxu0 %v653_v55 }
  0x1b   :  { %120 = vperm.xlu0 %689, %v87_v9   ;;  %358 = vperm.xlu1 %690, %v354_v11  }
  0x1c   :  { %595 = vmatmul.mubr.msk.f32.gmra.mrb[2].mxu1 %vm123_vm1, %v25_v6 }
  0x1d   :  { %656 = vmatpush3.bf16.msra.mxu0 %v655_v0  ;;  %597 = vmatprep.mubr.msk.f32.mxu1 %vm712_vm0, %v713_v4 }
  0x1e   :  { %658 = vmatprep.subr.bf16.mxu0 %v657_v1 }
  0x1f   :  { %363 = vperm.xlu0 %689, %v355_v14  }
  0x20   :  { %598 = vmatmul.mubr.msk.f32.gmra.mrb[4].mxu1 %vm123_vm1, %v28_v10 }
  0x21   :  { %660 = vmatpush3.bf16.msra.mxu0 %v659_v8  ;;  %600 = vmatprep.mubr.msk.f32.mxu1 %vm712_vm0, %v713_v4 }
  0x24   :  { %210 = vmatmul.mubr.f32.vlgmr.msra.gmra.mrb[0].mxu0 %v20_v12  ;;  %601 = vmatmul.mubr.msk.f32.gmra.mrb[6].mxu1 %vm123_vm1, %v31_v15 }
  0x25   :  { %214 = vmatprep.mubr.f32.mxu0 %v24_v13  ;;  %603 = vmatprep.mubr.msk.f32.mxu1 %vm712_vm0, %v713_v4 }
  0x28   :  { %215 = vmatmul.mubr.f32.gmra.mrb[2].mxu0 %v23_v16  ;;  %604 = vmatmul.mubr.msk.f32.gmra.mrb[8].mxu1 %vm123_vm1, %v34_v18 }
  0x29   :  { %219 = vmatprep.mubr.f32.mxu0 %v27_v17  ;;  %606 = vmatprep.mubr.msk.f32.mxu1 %vm712_vm0, %v713_v4 }
  0x2c   :  { %220 = vmatmul.mubr.f32.gmra.mrb[4].mxu0 %v26_v19  ;;  %607 = vmatmul.mubr.msk.f32.gmra.mrb[10].mxu1 %vm123_vm1, %v37_v21 }
  0x2d   :  { %224 = vmatprep.mubr.f32.mxu0 %v30_v20  ;;  %609 = vmatprep.mubr.msk.f32.mxu1 %vm712_vm0, %v713_v4  ;;  %v35_v4 = vld [vmem:[%s1001_s1 + $0x78] sm:$0xff] }
  0x30   :  { %225 = vmatmul.mubr.f32.gmra.mrb[6].mxu0 %v29_v22  ;;  %610 = vmatmul.mubr.msk.f32.gmra.mrb[12].mxu1 %vm123_vm1, %v40_v24 }
  0x31   :  { %229 = vmatprep.mubr.f32.mxu0 %v33_v23  ;;  %626 = vmatprep.mubr.msk.f32.mxu1 %vm366_vm2, %v352_v29 }
  0x34   :  { %230 = vmatmul.mubr.f32.gmra.mrb[8].mxu0 %v32_v25 }
  0x35   :  { %234 = vmatprep.mubr.f32.mxu0 %v36_v26 }
  0x38   :  { %235 = vmatmul.mubr.f32.gmra.mrb[10].mxu0 %v35_v4 }
  0x39   :  { %239 = vmatprep.mubr.f32.mxu0 %v39_v27 }
  0x3c   :  { %240 = vmatmul.mubr.f32.gmra.mrb[12].mxu0 %v38_v28 }
  0x8e   :  { %v91_v37 = vpop.permute.xlu0 %90  ;;  %v101_v52 = vpop.permute.xlu1 %100 }
  0x92   :  { %v96_v47 = vpop.permute.xlu0 %95  ;;  %v106_v63 = vpop.permute.xlu1 %105 }
  0x96   :  { %v111_v8 = vpop.permute.xlu0 %110  ;;  %v116_v16 = vpop.permute.xlu1 %115 }
  0x9a   :  { %v121_v23 = vpop.permute.xlu0 %120 }
  0xeb   :  { %v311_v30 = vpop.f32.mrb[0].mxu1 }
  0xec   :  { %v593_v31 = vpop.f32.mrb[1].mxu1 }
  0xef   :  { %v316_v32 = vpop.f32.mrb[2].mxu1 }
  0xf0   :  { %v596_v33 = vpop.f32.mrb[3].mxu1 }
  0xf1   :  { %v364_v33 = vpop.permute.xlu0 %363 }
  0xf3   :  { %v321_v34 = vpop.f32.mrb[4].mxu1 }
  0xf4   :  { %v599_v36 = vpop.f32.mrb[5].mxu1 }
  0xf7   :  { %v530_v35 = vpop.f32.mrb[0].mxu0  ;;  %v326_v40 = vpop.f32.mrb[6].mxu1 }
  0xf8   :  { %v531_v38 = vpop.f32.mrb[1].mxu0  ;;  %v602_v43 = vpop.f32.mrb[7].mxu1 }
  0xf9   :  { %v532_v39 = vadd.f32 %v531_v38, %v530_v35  ;;  %v359_v35 = vpop.permute.xlu1 %358 }
  0xfb   :  { %v533_v41 = vpop.f32.mrb[2].mxu0  ;;  %v212_v42 = vadd.f32 %v532_v39, %v91_v37  ;;  %v331_v48 = vpop.f32.mrb[8].mxu1 }
  0xfc   :  { %v534_v44 = vpop.f32.mrb[3].mxu0  ;;  %v605_v51 = vpop.f32.mrb[9].mxu1 }
  0xfd   :  { %v312_v45 = vadd.f32 %v311_v30, %v212_v42  ;;  %v535_v46 = vadd.f32 %v534_v44, %v533_v41 }
  0xff   :  { %v536_v49 = vpop.f32.mrb[4].mxu0  ;;  %v217_v50 = vadd.f32 %v535_v46, %v96_v47  ;;  %691 = vtanh.f32 %v312_v45  ;;  %v336_v56 = vpop.f32.mrb[10].mxu1 }
 0x100   :  { %v537_v53 = vpop.f32.mrb[5].mxu0  ;;  %v608_v59 = vpop.f32.mrb[11].mxu1 }
 0x101   :  { %v317_v54 = vadd.f32 %v316_v32, %v217_v50  ;;  %v538_v55 = vadd.f32 %v537_v53, %v536_v49  ;;  %v353_v32 = vld [vmem:[%s1004_s3 + $0x8] sm:$0x3] }
 0x103   :  { %693 = vtanh.f32 %v317_v54  ;;  %v539_v57 = vpop.f32.mrb[6].mxu0  ;;  %v222_v58 = vadd.f32 %v538_v55, %v101_v52  ;;  %v341_v0 = vpop.f32.mrb[12].mxu1 }
 0x104   :  { %v540_v60 = vpop.f32.mrb[7].mxu0  ;;  %v611_v3 = vpop.f32.mrb[13].mxu1 }
 0x105   :  { %v322_v61 = vadd.f32 %v321_v34, %v222_v58  ;;  %v541_v62 = vadd.f32 %v540_v60, %v539_v57 }
 0x107   :  { %v542_v1 = vpop.f32.mrb[8].mxu0  ;;  %v227_v2 = vadd.f32 %v541_v62, %v106_v63  ;;  %695 = vtanh.f32 %v322_v61 }
 0x108   :  { %v543_v5 = vpop.f32.mrb[9].mxu0 }
 0x109   :  { %v327_v6 = vadd.f32 %v326_v40, %v227_v2  ;;  %v544_v7 = vadd.f32 %v543_v5, %v542_v1  ;;  %v692_v11 = vpop.eup %691 }
 0x10b   :  { %697 = vtanh.f32 %v327_v6  ;;  %v545_v9 = vpop.f32.mrb[10].mxu0  ;;  %v232_v10 = vadd.f32 %v544_v7, %v111_v8 }
 0x10c   :  { %v546_v12 = vpop.f32.mrb[11].mxu0 }
 0x10d   :  { %v694_v13 = vpop.eup %693  ;;  %v332_v14 = vadd.f32 %v331_v48, %v232_v10  ;;  %v547_v15 = vadd.f32 %v546_v12, %v545_v9 }
 0x10e   :  { %v673_v17 = vpack.c.bf16 %v694_v13, %v692_v11 }
 0x10f   :  { %v548_v18 = vpop.f32.mrb[12].mxu0  ;;  %v237_v19 = vadd.f32 %v547_v15, %v116_v16  ;;  %699 = vtanh.f32 %v332_v14 }
 0x110   :  { %v549_v20 = vpop.f32.mrb[13].mxu0  ;;  %674 = vmatprep.subr.bf16.mxu1 %v673_v17 }
 0x111   :  { %v337_v21 = vadd.f32 %v336_v56, %v237_v19  ;;  %v550_v22 = vadd.f32 %v549_v20, %v548_v18  ;;  %676 = vmatpush3.bf16.msra.mxu1 %v673_v17  ;;  %v696_v25 = vpop.eup %695 }
 0x113   :  { %701 = vtanh.f32 %v337_v21  ;;  %v242_v24 = vadd.f32 %v550_v22, %v121_v23 }
 0x115   :  { %v698_v26 = vpop.eup %697  ;;  %v342_v4 = vadd.f32 %v341_v0, %v242_v24 }
 0x116   :  { %v677_v27 = vpack.c.bf16 %v698_v26, %v696_v25 }
 0x117   :  { %703 = vtanh.f32 %v342_v4 }
 0x118   :  { %678 = vmatprep.subr.bf16.mxu1 %v677_v27 }
 0x119   :  { %680 = vmatpush3.bf16.msra.mxu1 %v677_v27  ;;  %v700_v28 = vpop.eup %699 }
 0x11d   :  { %v702_v29 = vpop.eup %701 }
 0x11e   :  { %v681_v30 = vpack.c.bf16 %v702_v29, %v700_v28 }
 0x120   :  { %682 = vmatprep.subr.bf16.mxu1 %v681_v30 }
 0x121   :  { %v704_v31 = vpop.eup %703  ;;  %684 = vmatpush3.bf16.msra.mxu1 %v681_v30 }
 0x122   :  { %624 = vmatprep.subr.msk.mxu1 %vm373_vm3, %v704_v31 }
 0x125   :  { %625 = vmatpush3.msk.msra.mxu1 %vm373_vm3, %v704_v31 }
 0x126   :  { %627 = vmatmul.mubr.msk.f32.vlgmr.msra.gmra.mrb[14].mxu1 %vm366_vm2, %v353_v32 }
 0x1f9   :  { %v628_v34 = vpop.f32.mrb[14].mxu1 }
 0x1fa   :  { %v449_v36 = vadd.f32 %v628_v34, %v364_v33  ;;  %v443_v37 = vpop.f32.mrb[15].mxu1 }
 0x1fb   :  { %v444_v38 = vadd.f32 %v443_v37, %v359_v35 }
 0x1fc   :  { %v455_v39 = vsel %vm454_vm4, %v449_v36, -inf }
 0x1fd   :  { %v453_v40 = vsel %vm452_vm5, %v444_v38, -inf }
 0x1fe   :  { %v456_v41 = vmax.f32 %v453_v40, %v455_v39 }
 0x200   :  { %v457_v42 = vrot.slane %v456_v41, 4 }
 0x202   :  { %v458_v43 = vmax.f32 %v456_v41, %v457_v42 }
 0x204   :  { %v459_v44 = vrot.slane %v458_v43, 2 }
 0x206   :  { %v460_v45 = vmax.f32 %v458_v43, %v459_v44 }
 0x208   :  { %v461_v46 = vrot.slane %v460_v45, 1 }
 0x20a   :  { %v462_v47 = vmax.f32 %v460_v45, %v461_v46 }
 0x20c   :  { %v463_v48 = vsub.f32 %v444_v38, %v462_v47  ;;  %v464_v49 = vsub.f32 %v449_v36, %v462_v47 }
 0x20e   :  { %v465_v50 = vmul.f32 1.442695, %v463_v48  ;;  %v467_v51 = vmul.f32 1.442695, %v464_v49 }
 0x210   :  { %705 = vpow2.f32 %v465_v50 }
 0x211   :  { %707 = vpow2.f32 %v467_v51 }
 0x21a   :  { %v706_v52 = vpop.eup %705 }
 0x21b   :  { %v708_v53 = vpop.eup %707  ;;  %v469_v54 = vsel %vm452_vm5, %v706_v52, 0.0 }
 0x21c   :  { %v470_v55 = vsel %vm454_vm4, %v708_v53, 0.0 }
 0x21d   :  { %v471_v56 = vadd.f32 %v470_v55, %v469_v54 }
 0x21f   :  { %v472_v57 = vrot.slane %v471_v56, 4 }
 0x221   :  { %v473_v58 = vadd.f32 %v472_v57, %v471_v56 }
 0x223   :  { %v474_v59 = vrot.slane %v473_v58, 2 }
 0x225   :  { %v475_v60 = vadd.f32 %v474_v59, %v473_v58 }
 0x227   :  { %v476_v61 = vrot.slane %v475_v60, 1 }
 0x229   :  { %v477_v62 = vadd.f32 %v476_v61, %v475_v60 }
 0x22b   :  { %709 = vlog2.f32 %v477_v62 }
 0x235   :  { %v710_v63 = vpop.eup %709 }
 0x236   :  { %v479_v0 = vmul.f32 0.6931472, %v710_v63 }
 0x238   :  { %v480_v1 = vsub.f32 %v463_v48, %v479_v0  ;;  %v481_v2 = vsub.f32 %v464_v49, %v479_v0 }
 0x23a   :  { %482 = vst.msk [vmem:[%s1005_s5] sm:$0xff] %vm452_vm5, %v480_v1 }
 0x23b   :  { %483 = vst.msk [vmem:[%s1005_s5 + $0x8] sm:$0x3] %vm454_vm4, %v481_v2 }

// kernel: net_forward.4
= control target key start
LH: loop header
LB: loop body
LE: loop exit
PB: predicated region body
PF: predicated region fallthrough
CT: control target
= control target key end

     0   :  { %v1183_v1 = vmov 0   ;;  %vm167_vm0 = vcmask 1044480   ;;  %vm160_vm1 = vcmask 998400   ;;  %vm802_vm2 = vcmask 257024   ;;  %s1447_s0 = inlined_call_operand.vmem [shape: bf16[4,250,32], index: 0, kind: input, shape index: {}]   ;;  %s1448_s1 = inlined_call_operand.vmem [shape: bf16[20,250], index: 1, kind: input, shape index: {}]   ;;  %s1449_s2 = inlined_call_operand.vmem [shape: f32[20,1], index: 2, kind: input, shape index: {}]   ;;  %s1450_s3 = inlined_call_operand.vmem [shape: bf16[20,32], index: 3, kind: output, shape index: {}]  }
   0x1   :  { %v1108_v0 = vld [vmem:[%s1447_s0 + $0x40] sm:$0xff]   ;;  %1106 = vset.pattern.permute.xlu0 %v1183_v1  ;;  %1107 = vset.pattern.permute.xlu1 %v1183_v1  ;;  %v1112_v5 = vld [vmem:[%s1447_s0 + $0x48] sm:$0xff]   ;;  %v1116_v9 = vld [vmem:[%s1447_s0 + $0x50] sm:$0xff]   ;;  %vm805_vm3 = vcmask 254976  }
   0x2   :  { %v1109_v2 = vld [vmem:[%s1447_s0 + $0xc0] sm:$0xff]   ;;  %989 = vmatprep.subr.bf16.mxu0 %v1108_v0  ;;  %v1113_v6 = vld [vmem:[%s1447_s0 + $0xc8] sm:$0xff]   ;;  %v1117_v10 = vld [vmem:[%s1447_s0 + $0xd0] sm:$0xff]  }
   0x3   :  { %v1110_v3 = vld [vmem:[%s1447_s0] sm:$0xff]   ;;  %1017 = vmatprep.subr.bf16.mxu1 %v1109_v2  ;;  %v1114_v7 = vld [vmem:[%s1447_s0 + $0x8] sm:$0xff]   ;;  %v1118_v11 = vld [vmem:[%s1447_s0 + $0x10] sm:$0xff]  }
   0x4   :  { %v1111_v4 = vld [vmem:[%s1447_s0 + $0x80] sm:$0xff]   ;;  %990 = vmatpush3.bf16.msra.mxu0 %v1110_v3  ;;  %v1115_v8 = vld [vmem:[%s1447_s0 + $0x88] sm:$0xff]   ;;  %v1119_v12 = vld [vmem:[%s1447_s0 + $0x90] sm:$0xff]  }
   0x5   :  { %1018 = vmatpush3.bf16.msra.mxu1 %v1111_v4  ;;  %991 = vmatprep.subr.bf16.mxu0 %v1112_v5  ;;  %v1120_v13 = vld [vmem:[%s1447_s0 + $0x58] sm:$0xff]   ;;  %v1124_v17 = vld [vmem:[%s1447_s0 + $0x60] sm:$0xff]   ;;  %v1128_v21 = vld [vmem:[%s1447_s0 + $0x68] sm:$0xff]  }
   0x6   :  { %1019 = vmatprep.subr.bf16.mxu1 %v1113_v6  ;;  %v1121_v14 = vld [vmem:[%s1447_s0 + $0xd8] sm:$0xff]   ;;  %v1125_v18 = vld [vmem:[%s1447_s0 + $0xe0] sm:$0xff]   ;;  %v1129_v22 = vld [vmem:[%s1447_s0 + $0xe8] sm:$0xff]  }
   0x7   :  { %v1122_v15 = vld [vmem:[%s1447_s0 + $0x18] sm:$0xff]   ;;  %v1126_v19 = vld [vmem:[%s1447_s0 + $0x20] sm:$0xff]   ;;  %v1130_v23 = vld [vmem:[%s1447_s0 + $0x28] sm:$0xff]  }
   0x8   :  { %992 = vmatpush3.bf16.msra.mxu0 %v1114_v7  ;;  %v1123_v16 = vld [vmem:[%s1447_s0 + $0x98] sm:$0xff]   ;;  %v1127_v20 = vld [vmem:[%s1447_s0 + $0xa0] sm:$0xff]   ;;  %v1131_v24 = vld [vmem:[%s1447_s0 + $0xa8] sm:$0xff]  }
   0x9   :  { %1020 = vmatpush3.bf16.msra.mxu1 %v1115_v8  ;;  %993 = vmatprep.subr.bf16.mxu0 %v1116_v9  ;;  %v1132_v25 = vld [vmem:[%s1447_s0 + $0x70] sm:$0xff]   ;;  %v1136_v29 = vld [vmem:[%s1447_s0 + $0x78] sm:$0x1f]   ;;  %v1305_v33 = vld [vmem:[%s1448_s1 + $0x4] ss:$8 sps:$4 sm:$0xff]  }
   0xa   :  { %1021 = vmatprep.subr.bf16.mxu1 %v1117_v10  ;;  %v1133_v26 = vld [vmem:[%s1447_s0 + $0xf0] sm:$0xff]   ;;  %v1137_v30 = vld [vmem:[%s1447_s0 + $0xf8] sm:$0x1f]   ;;  %v1310_v34 = vld [vmem:[%s1448_s1] ss:$8 sps:$4 sm:$0xff]   ;;  %831 = vmatprep.mubr.msk.bf16.mxu0 %vm160_vm1, %v1305_v33 }
   0xb   :  { %v1134_v27 = vld [vmem:[%s1447_s0 + $0x30] sm:$0xff]   ;;  %v1138_v31 = vld [vmem:[%s1447_s0 + $0x38] sm:$0xff]   ;;  %881 = vmatprep.mubr.msk.bf16.mxu1 %vm160_vm1, %v1305_v33  ;;  %v1143_v35 = vld [vmem:[%s1447_s0 + $0x140] sm:$0xff]  }
   0xc   :  { %994 = vmatpush3.bf16.msra.mxu0 %v1118_v11  ;;  %v1135_v28 = vld [vmem:[%s1447_s0 + $0xb0] sm:$0xff]   ;;  %v1139_v32 = vld [vmem:[%s1447_s0 + $0xb8] sm:$0xff]   ;;  %v1144_v36 = vld [vmem:[%s1447_s0 + $0x1c0] sm:$0xff]  }
   0xd   :  { %1022 = vmatpush3.bf16.msra.mxu1 %v1119_v12  ;;  %995 = vmatprep.subr.bf16.mxu0 %v1120_v13  ;;  %v1145_v37 = vld [vmem:[%s1447_s0 + $0x100] sm:$0xff]   ;;  %v1147_v39 = vld [vmem:[%s1447_s0 + $0x148] sm:$0xff]   ;;  %v1151_v43 = vld [vmem:[%s1447_s0 + $0x150] sm:$0xff]  }
   0xe   :  { %1023 = vmatprep.subr.bf16.mxu1 %v1121_v14  ;;  %v1146_v38 = vld [vmem:[%s1447_s0 + $0x180] sm:$0xff]   ;;  %v1148_v40 = vld [vmem:[%s1447_s0 + $0x1c8] sm:$0xff]   ;;  %v1152_v44 = vld [vmem:[%s1447_s0 + $0x1d0] sm:$0xff]  }
   0xf   :  { %v1149_v41 = vld [vmem:[%s1447_s0 + $0x108] sm:$0xff]   ;;  %v1153_v45 = vld [vmem:[%s1447_s0 + $0x110] sm:$0xff]   ;;  %v1155_v47 = vld [vmem:[%s1447_s0 + $0x158] sm:$0xff]  }
  0x10   :  { %996 = vmatpush3.bf16.msra.mxu0 %v1122_v15  ;;  %v1150_v42 = vld [vmem:[%s1447_s0 + $0x188] sm:$0xff]   ;;  %v1154_v46 = vld [vmem:[%s1447_s0 + $0x190] sm:$0xff]   ;;  %v1156_v48 = vld [vmem:[%s1447_s0 + $0x1d8] sm:$0xff]  }
  0x11   :  { %1024 = vmatpush3.bf16.msra.mxu1 %v1123_v16  ;;  %997 = vmatprep.subr.bf16.mxu0 %v1124_v17  ;;  %v1157_v49 = vld [vmem:[%s1447_s0 + $0x118] sm:$0xff]   ;;  %v1159_v51 = vld [vmem:[%s1447_s0 + $0x160] sm:$0xff]   ;;  %v17_v55 = vld [vmem:[%s1448_s1 + $0x10] sm:$0x33] }
  0x12   :  { %1025 = vmatprep.subr.bf16.mxu1 %v1125_v18  ;;  %v1158_v50 = vld [vmem:[%s1447_s0 + $0x198] sm:$0xff]   ;;  %v1160_v52 = vld [vmem:[%s1447_s0 + $0x1e0] sm:$0xff]   ;;  %v814_v56 = vcombine.high %v17_v55, %v17_v55  ;;  %v1164_v57 = vld [vmem:[%s1447_s0 + $0x168] sm:$0xff]   ;;  %v813_v58 = vcombine.low %v17_v55, %v17_v55 }
  0x13   :  { %v1161_v53 = vld [vmem:[%s1447_s0 + $0x120] sm:$0xff]   ;;  %v1165_v59 = vld [vmem:[%s1447_s0 + $0x1e8] sm:$0xff]   ;;  %v1169_v62 = vld [vmem:[%s1447_s0 + $0x170] sm:$0xff]  }
  0x14   :  { %998 = vmatpush3.bf16.msra.mxu0 %v1126_v19  ;;  %v1162_v54 = vld [vmem:[%s1447_s0 + $0x1a0] sm:$0xff]   ;;  %v1167_v60 = vld [vmem:[%s1447_s0 + $0x128] sm:$0xff]   ;;  %v1170_v63 = vld [vmem:[%s1447_s0 + $0x1f0] sm:$0xff]  }
  0x15   :  { %1026 = vmatpush3.bf16.msra.mxu1 %v1127_v20  ;;  %999 = vmatprep.subr.bf16.mxu0 %v1128_v21  ;;  %v1168_v61 = vld [vmem:[%s1447_s0 + $0x1a8] sm:$0xff]   ;;  %v1171_v0 = vld [vmem:[%s1447_s0 + $0x130] sm:$0xff]   ;;  %v1173_v2 = vld [vmem:[%s1447_s0 + $0x178] sm:$0x1f]  }
  0x16   :  { %1027 = vmatprep.subr.bf16.mxu1 %v1129_v22  ;;  %v1172_v1 = vld [vmem:[%s1447_s0 + $0x1b0] sm:$0xff]   ;;  %v1174_v3 = vld [vmem:[%s1447_s0 + $0x1f8] sm:$0x1f]   ;;  %v765_v6 = vld [vmem:[%s1449_s2] sm:$0xff] }
  0x17   :  { %v1175_v4 = vld [vmem:[%s1447_s0 + $0x138] sm:$0xff]   ;;  %770 = vperm.xlu0 %1106, %v765_v6   ;;  %v767_v7 = vld [vmem:[%s1449_s2 + $0x10] sm:$0xf]  ;;  %v766_v8 = vld [vmem:[%s1449_s2 + $0x8] sm:$0xff] }
  0x18   :  { %1000 = vmatpush3.bf16.msra.mxu0 %v1130_v23  ;;  %v1176_v5 = vld [vmem:[%s1447_s0 + $0x1b8] sm:$0xff]   ;;  %780 = vperm.xlu1 %1107, %v767_v7  }
  0x19   :  { %1028 = vmatpush3.bf16.msra.mxu1 %v1131_v24  ;;  %1001 = vmatprep.subr.bf16.mxu0 %v1132_v25 }
  0x1a   :  { %1029 = vmatprep.subr.bf16.mxu1 %v1133_v26 }
  0x1b   :  { %775 = vperm.xlu0 %1106, %v766_v8  }
  0x1c   :  { %1002 = vmatpush3.bf16.msra.mxu0 %v1134_v27 }
  0x1d   :  { %1030 = vmatpush3.bf16.msra.mxu1 %v1135_v28  ;;  %1101 = vmatprep.subr.msk.bf16.mxu0 %vm167_vm0, %v1136_v29 }
  0x1e   :  { %1102 = vmatprep.subr.msk.bf16.mxu1 %vm167_vm0, %v1137_v30 }
  0x20   :  { %1004 = vmatpush3.bf16.msra.mxu0 %v1138_v31 }
  0x21   :  { %1032 = vmatpush3.bf16.msra.mxu1 %v1139_v32  ;;  %1045 = vmatprep.subr.bf16.mxu0 %v1143_v35 }
  0x22   :  { %1073 = vmatprep.subr.bf16.mxu1 %v1144_v36 }
  0x23   :  { %204 = vmatmul.mubr.bf16.vlgmr.msra.gmra.mrb[0].mxu0 %v1310_v34 }
  0x24   :  { %383 = vmatmul.mubr.bf16.vlgmr.msra.gmra.mrb[0].mxu1 %v1310_v34  ;;  %1046 = vmatpush3.bf16.msra.mxu0 %v1145_v37 }
  0x25   :  { %1074 = vmatpush3.bf16.msra.mxu1 %v1146_v38  ;;  %1047 = vmatprep.subr.bf16.mxu0 %v1147_v39 }
  0x26   :  { %1075 = vmatprep.subr.bf16.mxu1 %v1148_v40  ;;  %832 = vmatprep.mubr.msk.bf16.mxu0 %vm160_vm1, %v814_v56 }
  0x27   :  { %882 = vmatprep.mubr.msk.bf16.mxu1 %vm160_vm1, %v814_v56 }
  0x28   :  { %1048 = vmatpush3.bf16.msra.mxu0 %v1149_v41 }
  0x29   :  { %1076 = vmatpush3.bf16.msra.mxu1 %v1150_v42  ;;  %1049 = vmatprep.subr.bf16.mxu0 %v1151_v43 }
  0x2a   :  { %1077 = vmatprep.subr.bf16.mxu1 %v1152_v44 }
  0x2b   :  { %212 = vmatmul.mubr.bf16.gmra.mrb[4].mxu0 %v813_v58 }
  0x2c   :  { %1050 = vmatpush3.bf16.msra.mxu0 %v1153_v45  ;;  %391 = vmatmul.mubr.bf16.gmra.mrb[4].mxu1 %v813_v58 }
  0x2d   :  { %1078 = vmatpush3.bf16.msra.mxu1 %v1154_v46  ;;  %1051 = vmatprep.subr.bf16.mxu0 %v1155_v47 }
  0x2e   :  { %1079 = vmatprep.subr.bf16.mxu1 %v1156_v48  ;;  %931 = vmatprep.mubr.msk.bf16.mxu0 %vm160_vm1, %v1305_v33 }
  0x2f   :  { %981 = vmatprep.mubr.msk.bf16.mxu1 %vm160_vm1, %v1305_v33 }
  0x30   :  { %1052 = vmatpush3.bf16.msra.mxu0 %v1157_v49 }
  0x31   :  { %1080 = vmatpush3.bf16.msra.mxu1 %v1158_v50  ;;  %1053 = vmatprep.subr.bf16.mxu0 %v1159_v51 }
  0x32   :  { %1081 = vmatprep.subr.bf16.mxu1 %v1160_v52 }
  0x34   :  { %1054 = vmatpush3.bf16.msra.mxu0 %v1161_v53 }
  0x35   :  { %1082 = vmatpush3.bf16.msra.mxu1 %v1162_v54  ;;  %1055 = vmatprep.subr.bf16.mxu0 %v1164_v57 }
  0x36   :  { %1083 = vmatprep.subr.bf16.mxu1 %v1165_v59 }
  0x38   :  { %1056 = vmatpush3.bf16.msra.mxu0 %v1167_v60 }
  0x39   :  { %1084 = vmatpush3.bf16.msra.mxu1 %v1168_v61  ;;  %1057 = vmatprep.subr.bf16.mxu0 %v1169_v62 }
  0x3a   :  { %1085 = vmatprep.subr.bf16.mxu1 %v1170_v63 }
  0x3c   :  { %1058 = vmatpush3.bf16.msra.mxu0 %v1171_v0 }
  0x3d   :  { %1086 = vmatpush3.bf16.msra.mxu1 %v1172_v1  ;;  %1103 = vmatprep.subr.msk.bf16.mxu0 %vm167_vm0, %v1173_v2 }
  0x3e   :  { %1104 = vmatprep.subr.msk.bf16.mxu1 %vm167_vm0, %v1174_v3 }
  0x40   :  { %1060 = vmatpush3.bf16.msra.mxu0 %v1175_v4 }
  0x41   :  { %1088 = vmatpush3.bf16.msra.mxu1 %v1176_v5 }
  0x43   :  { %565 = vmatmul.mubr.bf16.vlgmr.msra.gmra.mrb[8].mxu0 %v1310_v34 }
  0x44   :  { %744 = vmatmul.mubr.bf16.vlgmr.msra.gmra.mrb[8].mxu1 %v1310_v34  ;;  %932 = vmatprep.mubr.msk.bf16.mxu0 %vm160_vm1, %v814_v56 }
  0x45   :  { %982 = vmatprep.mubr.msk.bf16.mxu1 %vm160_vm1, %v814_v56 }
  0x4b   :  { %573 = vmatmul.mubr.bf16.gmra.mrb[12].mxu0 %v813_v58 }
  0x4c   :  { %752 = vmatmul.mubr.bf16.gmra.mrb[12].mxu1 %v813_v58 }
  0x96   :  { %v771_v34 = vpop.permute.xlu0 %770 }
  0x97   :  { %v781_v1 = vpop.permute.xlu1 %780 }
  0x9a   :  { %v776_v50 = vpop.permute.xlu0 %775 }
  0xf6   :  { %v1005_v9 = vpop.f32.mrb[0].mxu0 }
  0xf7   :  { %v1033_v10 = vpop.f32.mrb[0].mxu1  ;;  %v1006_v11 = vpop.f32.mrb[1].mxu0 }
  0xf8   :  { %v1007_v12 = vadd.f32 %v1006_v11, %v1005_v9  ;;  %v1034_v13 = vpop.f32.mrb[1].mxu1  ;;  %v1008_v14 = vpop.f32.mrb[2].mxu0 }
  0xf9   :  { %v1035_v15 = vadd.f32 %v1034_v13, %v1033_v10  ;;  %v1036_v16 = vpop.f32.mrb[2].mxu1  ;;  %v1009_v17 = vpop.f32.mrb[3].mxu0 }
  0xfa   :  { %v1010_v18 = vadd.f32 %v1009_v17, %v1008_v14  ;;  %v1037_v19 = vpop.f32.mrb[3].mxu1 }
  0xfb   :  { %v398_v20 = vmax.f32 %v1007_v12, %v1035_v15  ;;  %v1038_v21 = vadd.f32 %v1037_v19, %v1036_v16 }
  0xfd   :  { %v399_v22 = vmax.f32 %v1010_v18, %v1038_v21 }
  0xfe   :  { %v1011_v23 = vpop.f32.mrb[4].mxu0 }
  0xff   :  { %v1039_v24 = vpop.f32.mrb[4].mxu1  ;;  %v1012_v25 = vpop.f32.mrb[5].mxu0 }
 0x100   :  { %v1040_v26 = vpop.f32.mrb[5].mxu1  ;;  %v1013_v27 = vadd.f32 %v1012_v25, %v1011_v23  ;;  %v1014_v29 = vpop.f32.mrb[6].mxu0 }
 0x101   :  { %v1041_v28 = vadd.f32 %v1040_v26, %v1039_v24  ;;  %v1042_v30 = vpop.f32.mrb[6].mxu1  ;;  %v1015_v31 = vpop.f32.mrb[7].mxu0 }
 0x102   :  { %v1043_v32 = vpop.f32.mrb[7].mxu1 }
 0x103   :  { %v400_v33 = vmax.f32 %v1013_v27, %v1041_v28 }
 0x116   :  { %v1061_v35 = vpop.f32.mrb[8].mxu0 }
 0x117   :  { %v1089_v36 = vpop.f32.mrb[8].mxu1  ;;  %v1062_v37 = vpop.f32.mrb[9].mxu0 }
 0x118   :  { %v1090_v38 = vpop.f32.mrb[9].mxu1  ;;  %v1063_v39 = vadd.f32 %v1062_v37, %v1061_v35  ;;  %v1064_v41 = vpop.f32.mrb[10].mxu0 }
 0x119   :  { %v1091_v40 = vadd.f32 %v1090_v38, %v1089_v36  ;;  %v1092_v42 = vpop.f32.mrb[10].mxu1  ;;  %v1065_v43 = vpop.f32.mrb[11].mxu0 }
 0x11a   :  { %v1093_v44 = vpop.f32.mrb[11].mxu1  ;;  %v1066_v46 = vadd.f32 %v1065_v43, %v1064_v41 }
 0x11b   :  { %v759_v45 = vmax.f32 %v1063_v39, %v1091_v40  ;;  %v1094_v47 = vadd.f32 %v1093_v44, %v1092_v42 }
 0x11d   :  { %v760_v48 = vmax.f32 %v1066_v46, %v1094_v47  ;;  %v762_v49 = vmax.f32 %v398_v20, %v759_v45 }
 0x11e   :  { %v1067_v52 = vpop.f32.mrb[12].mxu0 }
 0x11f   :  { %v783_v51 = vadd.f32 %v771_v34, %v762_v49  ;;  %v1095_v53 = vpop.f32.mrb[12].mxu1  ;;  %v763_v54 = vmax.f32 %v399_v22, %v760_v48  ;;  %v1068_v55 = vpop.f32.mrb[13].mxu0 }
 0x120   :  { %v1096_v56 = vpop.f32.mrb[13].mxu1  ;;  %v1069_v58 = vadd.f32 %v1068_v55, %v1067_v52  ;;  %v1070_v60 = vpop.f32.mrb[14].mxu0 }
 0x121   :  { %1177 = vtanh.f32 %v783_v51  ;;  %v784_v57 = vadd.f32 %v776_v50, %v763_v54  ;;  %v1097_v59 = vadd.f32 %v1096_v56, %v1095_v53  ;;  %v1098_v61 = vpop.f32.mrb[14].mxu1  ;;  %v1071_v62 = vpop.f32.mrb[15].mxu0 }
 0x122   :  { %v1099_v63 = vpop.f32.mrb[15].mxu1 }
 0x123   :  { %1179 = vtanh.f32 %v784_v57  ;;  %v761_v0 = vmax.f32 %v1069_v58, %v1097_v59 }
 0x125   :  { %v764_v2 = vmax.f32 %v400_v33, %v761_v0 }
 0x127   :  { %v785_v3 = vadd.f32 %v781_v1, %v764_v2 }
 0x129   :  { %1181 = vtanh.f32 %v785_v3 }
 0x12b   :  { %v1178_v4 = vpop.eup %1177 }
 0x12c   :  { %v986_v5 = vpack.c.bf16 %v1178_v4, %v1178_v4 }
 0x12d   :  { %v1180_v6 = vpop.eup %1179 }
 0x12e   :  { %803 = vst.msk [vmem:[%s1450_s3] sm:$0xf] %vm802_vm2, %v986_v5  ;;  %v987_v7 = vpack.c.bf16 %v1180_v6, %v1180_v6 }
 0x130   :  { %804 = vst.msk [vmem:[%s1450_s3 + $0x4] sm:$0xf] %vm802_vm2, %v987_v7 }
 0x133   :  { %v1182_v8 = vpop.eup %1181 }
 0x134   :  { %v988_v9 = vpack.c.bf16 %v1182_v8, %v1182_v8 }
 0x136   :  { %806 = vst.msk [vmem:[%s1450_s3 + $0x8] sm:$0x3] %vm805_vm3, %v988_v9 }

</bundles_post_ra>
